<compile_context>
chip_gen: v6e
topology: v6e:2x2x1
jax: 0.10.0
libtpu: 0.0.40
codegen_flags: <defaults>
</compile_context>

<pallas_src>
import jax
import jax.numpy as jnp
import numpy as np
from jax.experimental import pallas as pl
from jax.experimental.pallas import tpu as pltpu

_VMEM_BUDGET = 24 * 1024 * 1024   # target double-buffered working set (bytes)
_VMEM_LIMIT = 32 * 1024 * 1024    # scoped VMEM limit handed to Mosaic


def _largest_div_tile(dim, max_tile, align=128):
    """Largest multiple-of-`align` divisor of `dim` that is <= max_tile
    (clamped to at least `align`); returns `dim` itself when `dim` is not
    align-divisible (full-extent blocks are always legal)."""
    if dim % align != 0:
        return dim
    t = max(align, min(dim, (max_tile // align) * align))
    while dim % t != 0:
        t -= align
    return t


# ---------------------------------------------------------------------------
# Kernel 1: box bounds per neuron (per-column reduction over the error axis).
# ---------------------------------------------------------------------------
def _box_kernel(x_ref, l_ref, u_ref):
    x = x_ref[...].astype(jnp.float32)                        # [E, BN]
    center = x[0:1, :]                                        # [1, BN]
    # sum(|x|) - |x0| avoids an unaligned x[1:] sublane slice.
    radius = jnp.sum(jnp.abs(x), axis=0, keepdims=True) - jnp.abs(center)
    l_ref[...] = center - radius
    u_ref[...] = center + radius


def _box_bounds(x):
    e, n = x.shape
    max_bn = min(max(_VMEM_BUDGET // ((e + 2) * 4 * 2), 128), 2048)
    bn = _largest_div_tile(n, max_bn)
    return pl.pallas_call(
        _box_kernel,
        out_shape=(jax.ShapeDtypeStruct((1, n), jnp.float32),
                   jax.ShapeDtypeStruct((1, n), jnp.float32)),
        grid_spec=pltpu.PrefetchScalarGridSpec(
            num_scalar_prefetch=0,
            grid=(n // bn,),
            in_specs=[pl.BlockSpec((e, bn), lambda j: (0, j))],
            out_specs=[pl.BlockSpec((1, bn), lambda j: (0, j)),
                       pl.BlockSpec((1, bn), lambda j: (0, j))],
        ),
        compiler_params=pltpu.CompilerParams(
            dimension_semantics=("parallel",),
            vmem_limit_bytes=_VMEM_LIMIT),
    )(x)


# ---------------------------------------------------------------------------
# Kernel 2 (primary): full-row column blocks.  Writes the [0, E) rows and the
# appended [E, E_out) error rows of the output directly -> no HBM zero-pad.
# ---------------------------------------------------------------------------
def _relu_cols_kernel(scale_ref, val_ref, eps_row_ref, x_ref, o_ref):
    e, bn = x_ref.shape
    e_out = o_ref.shape[0]
    ne = e_out - e                                            # static
    scale = scale_ref[...]                                    # [1, BN]
    val = val_ref[...]                                        # [1, BN]
    x = x_ref[...]                                            # [E, BN]

    rows = jax.lax.broadcasted_iota(jnp.int32, (e, bn), 0)
    top = x * scale + val * (rows == 0).astype(x.dtype)
    if ne == 0:
        o_ref[...] = top
    else:
        o_ref[0:e, :] = top
        # New error rows: val on the (global) row matching eps_row, else 0.
        rows_b = jax.lax.broadcasted_iota(jnp.int32, (ne, bn), 0) + e
        o_ref[e:e_out, :] = val * (rows_b == eps_row_ref[...]).astype(val.dtype)


# ---------------------------------------------------------------------------
# Kernel 2 (fallback): 2-D row+column tiled elementwise transform on a
# zero-padded zonotope:  y = x*scale + val*[(row == 0) | (row == eps_row)]
# ---------------------------------------------------------------------------
def _relu_rows_kernel(scale_ref, val_ref, eps_row_ref, x_ref, o_ref):
    br, bn = x_ref.shape
    row0 = pl.program_id(0) * br                              # global row offset
    rows = jax.lax.broadcasted_iota(jnp.int32, (br, bn), 0) + row0
    add_here = jnp.logical_or(rows == 0, rows == eps_row_ref[...])
    x = x_ref[...]
    o_ref[...] = x * scale_ref[...] + val_ref[...] * add_here.astype(x.dtype)


def relu_forward(x, lambdas=None, key=None):
    """Zonotope ReLU transformer.  x: [E, N] float32.

    Returns (out [E + new_errors, N], lambdas [N])."""
    e, n = x.shape
    x = x.astype(jnp.float32)

    # --- box bounds (Pallas reduction kernel) --------------------------------
    l2, u2 = _box_bounds(x)
    l, u = l2[0], u2[0]                                       # [N]
    crossing = (l < 0.0) & (u > 0.0)
    dead = u <= 0.0

    # Data-dependent output width: must be a Python int (static shape), so it
    # is resolved on the host, mirroring the module's dynamically-sized pad.
    new_errors = int(jnp.sum(crossing.astype(jnp.int32)))
    e_out = e + new_errors

    slope = u / jnp.where(crossing, u - l, jnp.float32(1.0))  # safe divide

    if lambdas is None:
        # TODO(synk): lazy torch.nn.Parameter init uses torch.randn/rand; we
        # mirror it deterministically with jax.random (no kernel equivalent).
        if key is None:
            key = jax.random.PRNGKey(0)
        kn, ku = jax.random.split(key)
        noisy = jnp.clip(slope + 0.3 * jax.random.normal(kn, (n,), jnp.float32),
                         0.0, 1.0)
        plain = jax.random.uniform(ku, (n,), dtype=jnp.float32)
        lambdas = jnp.where(crossing, noisy, plain)
    lambdas = lambdas.astype(jnp.float32)

    # Per-neuron scalars (hoisted out of the hot path).
    val_cross = jnp.where(lambdas >= slope,
                          -l * lambdas * 0.5,
                          u * (1.0 - lambdas) * 0.5)
    scale = jnp.where(dead, 0.0, jnp.where(crossing, lambdas, 1.0)).astype(jnp.float32)
    val = jnp.where(crossing, val_cross, 0.0).astype(jnp.float32)
    rank = jnp.cumsum(crossing.astype(jnp.int32)) - 1
    eps_row = jnp.where(crossing, e + rank, -1).astype(jnp.int32)

    scale2 = scale.reshape(1, n)
    val2 = val.reshape(1, n)
    eps2 = eps_row.reshape(1, n)

    # Can a full-row column block (x block + out block, double-buffered) fit
    # the VMEM budget?  If so, use the no-pad primary kernel.
    per_col_bytes = (e + e_out + 3) * 4 * 2
    if n % 128 == 0:
        max_bn = min((_VMEM_BUDGET // per_col_bytes) // 128 * 128, 2048)
        use_full_rows = max_bn >= 128
    else:
        max_bn = n
        use_full_rows = per_col_bytes * n <= _VMEM_BUDGET

    if use_full_rows:
        bn = _largest_div_tile(n, max_bn)
        out = pl.pallas_call(
            _relu_cols_kernel,
            out_shape=jax.ShapeDtypeStruct((e_out, n), jnp.float32),
            grid_spec=pltpu.PrefetchScalarGridSpec(
                num_scalar_prefetch=0,
                grid=(n // bn,),
                in_specs=[
                    pl.BlockSpec((1, bn), lambda j: (0, j)),   # scale
                    pl.BlockSpec((1, bn), lambda j: (0, j)),   # val
                    pl.BlockSpec((1, bn), lambda j: (0, j)),   # eps_row
                    pl.BlockSpec((e, bn), lambda j: (0, j)),   # zonotope (no pad)
                ],
                out_specs=pl.BlockSpec((e_out, bn), lambda j: (0, j)),
            ),
            compiler_params=pltpu.CompilerParams(
                dimension_semantics=("parallel",),
                vmem_limit_bytes=_VMEM_LIMIT),
        )(scale2, val2, eps2, x)
    else:
        # Fallback for extremely tall zonotopes: zero-pad the new error rows
        # (matches the module's ZeroPad2d) and tile both rows and columns.
        if new_errors > 0:
            x_in = jnp.concatenate(
                [x, jnp.zeros((new_errors, n), jnp.float32)], axis=0)
        else:
            x_in = x
        br = _largest_div_tile(e_out, 256, align=8)
        bn = _largest_div_tile(n, 512)
        out = pl.pallas_call(
            _relu_rows_kernel,
            out_shape=jax.ShapeDtypeStruct((e_out, n), jnp.float32),
            grid_spec=pltpu.PrefetchScalarGridSpec(
                num_scalar_prefetch=0,
                grid=(e_out // br, n // bn),
                in_specs=[
                    pl.BlockSpec((1, bn), lambda i, j: (0, j)),    # scale
                    pl.BlockSpec((1, bn), lambda i, j: (0, j)),    # val
                    pl.BlockSpec((1, bn), lambda i, j: (0, j)),    # eps_row
                    pl.BlockSpec((br, bn), lambda i, j: (i, j)),   # padded zonotope
                ],
                out_specs=pl.BlockSpec((br, bn), lambda i, j: (i, j)),
            ),
            compiler_params=pltpu.CompilerParams(
                dimension_semantics=("parallel", "parallel"),
                vmem_limit_bytes=_VMEM_LIMIT),
        )(scale2, val2, eps2, x_in)

    return out, lambdas


# ---------------------------------------------------------------------------
# Pure-numpy reference mirroring the PyTorch loop exactly.
# ---------------------------------------------------------------------------
def _reference(x_np, lam_np):
    e, n = x_np.shape
    center = x_np[0]
    radius = np.sum(np.abs(x_np[1:]), axis=0)
    l = center - radius
    u = center + radius
    new_errors = int(np.sum((l < 0) & (u > 0)))
    e_out = e + new_errors
    out = np.zeros((e_out, n), dtype=np.float32)
    eps_id = e
    for j in range(n):
        col = np.zeros(e_out, dtype=np.float32)
        col[:e] = x_np[:, j]
        if u[j] <= 0:
            col[:] = 0.0
        elif l[j] < 0:
            col = col * lam_np[j]
            if lam_np[j] >= u[j] / (u[j] - l[j]):
                val = -l[j] * lam_np[j] / 2
            else:
                val = u[j] * (1 - lam_np[j]) / 2
            col[eps_id] += val
            col[0] += val
            eps_id += 1
        out[:, j] = col
    return out


if __name__ == "__main__":
    key = jax.random.PRNGKey(0)
    kx, klam = jax.random.split(key)

    # Small shapes consistent with the module: 1 center row + 7 error terms,
    # in_features = 32 neurons  ->  input zonotope x: [E=8, N=32].
    E, N = 8, 32
    x = jax.random.normal(kx, (E, N), dtype=jnp.float32)

    out, lam = relu_forward(x, key=klam)
    out = jax.block_until_ready(out)

    ref = _reference(np.asarray(x, dtype=np.float32),
                     np.asarray(lam, dtype=np.float32))
    assert out.shape == ref.shape, (out.shape, ref.shape)
    assert out.dtype == jnp.float32
    assert np.allclose(np.asarray(out), ref, atol=1e-4, rtol=1e-5)

    print("KERNEL_OK")
</pallas_src>

<mosaic_0001>
module attributes {stable_mosaic.version = 11 : i64} {
  func.func @_box_kernel(%arg0: i32, %arg1: memref<8x32xf32, #tpu.memory_space<vmem>>, %arg2: memref<1x32xf32, #tpu.memory_space<vmem>>, %arg3: memref<1x32xf32, #tpu.memory_space<vmem>>) attributes {dimension_semantics = [#tpu.dimension_semantics<parallel>], iteration_bounds = array<i64: 1>, scalar_prefetch = 0 : i64, scratch_operands = 0 : i64, tpu.core_type = #tpu.core_type<tc>, window_params = [{transform_indices = @transform_0, window_bounds = array<i64: 8, 32>}, {transform_indices = @transform_1, window_bounds = array<i64: 1, 32>}, {transform_indices = @transform_2, window_bounds = array<i64: 1, 32>}]} {
    %c0 = arith.constant 0 : index
    %c0_0 = arith.constant 0 : index
    %0 = vector.load %arg1[%c0, %c0_0] : memref<8x32xf32, #tpu.memory_space<vmem>>, vector<8x32xf32>
    %1 = vector.extract_strided_slice %0 {offsets = [0, 0], sizes = [1, 32], strides = [1, 1]} : vector<8x32xf32> to vector<1x32xf32>
    %2 = math.absf %0 : vector<8x32xf32>
    %cst = arith.constant dense<0.000000e+00> : vector<32xf32>
    %3 = vector.multi_reduction <add>, %2, %cst [0] : vector<8x32xf32> to vector<32xf32>
    %4 = vector.shape_cast %3 : vector<32xf32> to vector<1x32xf32>
    %5 = math.absf %1 : vector<1x32xf32>
    %6 = arith.subf %4, %5 : vector<1x32xf32>
    %7 = arith.subf %1, %6 : vector<1x32xf32>
    %c0_1 = arith.constant 0 : index
    %c0_2 = arith.constant 0 : index
    %8 = vector.load %arg2[%c0_1, %c0_2] : memref<1x32xf32, #tpu.memory_space<vmem>>, vector<1x32xf32>
    tpu.vector_store %arg2[%c0_1, %c0_2], %7 {strides = array<i32>} : memref<1x32xf32, #tpu.memory_space<vmem>>, vector<1x32xf32>,
    %9 = arith.addf %1, %6 : vector<1x32xf32>
    %c0_3 = arith.constant 0 : index
    %c0_4 = arith.constant 0 : index
    %10 = vector.load %arg3[%c0_3, %c0_4] : memref<1x32xf32, #tpu.memory_space<vmem>>, vector<1x32xf32>
    tpu.vector_store %arg3[%c0_3, %c0_4], %9 {strides = array<i32>} : memref<1x32xf32, #tpu.memory_space<vmem>>, vector<1x32xf32>,
    return
  }
  func.func @transform_0(%arg0: i32) -> (i32, i32) {
    %c0_i32 = arith.constant 0 : i32
    %c0_i32_0 = arith.constant 0 : i32
    return %c0_i32, %arg0 : i32, i32
  }
  func.func @transform_1(%arg0: i32) -> (i32, i32) {
    %c0_i32 = arith.constant 0 : i32
    %c0_i32_0 = arith.constant 0 : i32
    return %c0_i32, %arg0 : i32, i32
  }
  func.func @transform_2(%arg0: i32) -> (i32, i32) {
    %c0_i32 = arith.constant 0 : i32
    %c0_i32_0 = arith.constant 0 : i32
    return %c0_i32, %arg0 : i32, i32
  }
}

</mosaic_0001>

<bundles_post_ra>
// kernel: tpu_custom_call.1
= control target key start
LH: loop header
LB: loop body
LE: loop exit
PB: predicated region body
PF: predicated region fallthrough
CT: control target
= control target key end

     0   :  { %8 = vsyncpa [#allocation3], 0  ;;  %s165_s0 = inlined_call_operand.hbm [shape: f32[8,32], index: 0, kind: input, shape index: {}]   ;;  %s166_s1 = inlined_call_operand.hbm [shape: f32[1,32], index: 1, kind: output, shape index: {0}]   ;;  %s167_s2 = inlined_call_operand.hbm [shape: f32[1,32], index: 2, kind: output, shape index: {1}]  }
   0x1   :  { %9 = vsyncpa [#allocation4], 0 }
   0x2   :  { %10 = vsyncpa [#allocation7], 0  ;;  %s138_s9 = smov [#allocation2]  }
   0x3   :  { %s17_s10 = sshll.u32 %s138_s9, 4  ;;  %s18_s10 = int_to_ptr.vmem [resolvable:$true] %s17_s10 }
   0x4   :  { %s80_s11 = scalar_lea.vmem %s18_s10, 128  ;;  %p85_p1 = scmp.lt.s32.totalorder %s18_s10, %s18_s10 }
   0x5   :  { %p81_p0 = scmp.ne.s32.totalorder %s18_s10, %s80_s11  ;;  %p86_p2 = scmp.lt.s32.totalorder %s80_s11, %s80_s11 }
   0x7   :  { %p87_p3 = por %p86_p2, %p85_p1 }
   0x9   :  { %p88_p4 = pnand %p87_p3, %p81_p0 }
   0xb   :  { %91 = shalt.err (!%p88_p4)
}
   0xc   :  { %20 = dma.hbm_to_vmem [thread:$0]  %s165_s0, 128, %s18_s10, [#allocation3]  }
   0xd   :  { %132 = dma.done.wait [#allocation3], 128  }
   0xe   :  { %133 = vsyncadd [#allocation3], 4294967168  ;;  %v24_v0 = vld [vmem:[#allocation2] sm:$0xff]  ;;  %vm26_vm0 = vcmask 261120   ;;  %s139_s14 = smov [#allocation5]   ;;  %s140_s16 = smov [#allocation6]  }
   0xf   :  { %v25_v1 = vand.u32 2147483647, %v24_v0  ;;  %s46_s15 = sshll.u32 %s139_s14, 4  ;;  %s56_s17 = sshll.u32 %s140_s16, 4  ;;  %vm36_vm1 = vcmask 253952   ;;  %s47_s15 = int_to_ptr.vmem [resolvable:$true] %s46_s15  ;;  %s57_s17 = int_to_ptr.vmem [resolvable:$true] %s56_s17 }
  0x10   :  { %s92_s0 = scalar_lea.vmem %s47_s15, 16  ;;  %s96_s18 = scalar_lea.vmem %s47_s15, 32 }
  0x11   :  { %v27_v2 = vsel %vm26_vm0, %v25_v1, 0.0  ;;  %p93_p5 = scmp.ne.s32.totalorder %s47_s15, %s92_s0  ;;  %p97_p6 = scmp.lt.s32.totalorder %s47_s15, %s47_s15 }
  0x12   :  { %v28_v3 = vrot.slane %v27_v2, 4  ;;  %p98_p7 = scmp.lt.s32.totalorder %s96_s18, %s92_s0 }
  0x14   :  { %v29_v4 = vadd.f32 %v28_v3, %v27_v2  ;;  %p99_p8 = por %p98_p7, %p97_p6 }
  0x16   :  { %v30_v5 = vrot.slane %v29_v4, 2  ;;  %p100_p9 = pnand %p99_p8, %p93_p5 }
  0x18   :  { %v31_v6 = vadd.f32 %v30_v5, %v29_v4 }
  0x1a   :  { %v32_v7 = vrot.slane %v31_v6, 1 }
  0x1c   :  { %v33_v8 = vadd.f32 %v32_v7, %v31_v6 }
  0x1e   :  { %v34_v9 = vsub.f32 %v33_v8, %v25_v1 }
  0x20   :  { %v35_v10 = vsub.f32 %v24_v0, %v34_v9  ;;  %v38_v11 = vadd.f32 %v34_v9, %v24_v0 }
  0x22   :  { %37 = vst.msk [vmem:[#allocation5] sm:$0x1] %vm36_vm1, %v35_v10  ;;  %39 = vst.msk [vmem:[#allocation6] sm:$0x1] %vm36_vm1, %v38_v11 }
  0x23   :  { %103 = shalt.err (!%p100_p9)
}
  0x24   :  { %49 = dma.vmem_to_hbm [thread:$0]  %s47_s15, 16, %s166_s1, [#allocation4]  }
  0x25   :  { %s112_s21 = scalar_lea.vmem %s57_s17, 16  ;;  %s116_s22 = scalar_lea.vmem %s57_s17, 32 }
  0x26   :  { %p113_p10 = scmp.ne.s32.totalorder %s57_s17, %s112_s21  ;;  %p117_p11 = scmp.lt.s32.totalorder %s57_s17, %s57_s17 }
  0x27   :  { %p118_p12 = scmp.lt.s32.totalorder %s116_s22, %s112_s21 }
  0x29   :  { %p119_p13 = por %p118_p12, %p117_p11 }
  0x2b   :  { %p120_p0 = pnand %p119_p13, %p113_p10 }
  0x2d   :  { %123 = shalt.err (!%p120_p0)
}
  0x2e   :  { %59 = dma.vmem_to_hbm [thread:$0]  %s57_s17, 16, %s167_s2, [#allocation7]  }
  0x2f   :  { %134 = dma.done.wait [#allocation4], 16  }
  0x30   :  { %135 = vsyncadd [#allocation4], 4294967280 }
  0x31   :  { %136 = dma.done.wait [#allocation7], 16  }
  0x32   :  { %137 = vsyncadd [#allocation7], 4294967280 }
  0x33   :  { %66 = vsyncpa [#allocation3], 1 }
  0x34   :  { %67 = vsyncpa [#allocation4], 1 }
  0x35   :  { %68 = vsyncpa [#allocation7], 1 }

</bundles_post_ra>
